<compile_context>
chip_gen: v6e
topology: v6e:2x2x1
jax: 0.10.0
libtpu: 0.0.40
codegen_flags: <defaults>
</compile_context>

<pallas_src>
import numpy as np
import jax
import jax.numpy as jnp
from jax import lax
from jax.experimental import pallas as pl
from jax.experimental.pallas import tpu as pltpu


def _round_up(x: int, m: int) -> int:
    return ((x + m - 1) // m) * m


def make_actor_kernel(act_limit: float, chunk: int, n_chunks: int):
    """Fused MLP->Tanh kernel operating on one (tb, obs_dim) batch tile.

    The batch tile is processed in `n_chunks` slabs of `chunk` rows each so
    that intermediate activations stay well under the 64-vreg register file
    even for large DMA tiles (review item: bound live ranges at tile_b >= 512).
    """

    def actor_kernel(obs_ref, w1_ref, b1_ref, w2_ref, b2_ref, w3_ref, b3_ref, out_ref):
        w_dtype = w1_ref.dtype  # MXU feed dtype (f32 or bf16); accumulation is f32

        # Resident weights / biases: tiny, loaded once per grid step.
        w1 = w1_ref[...]
        b1 = b1_ref[...]
        w2 = w2_ref[...]
        b2 = b2_ref[...]
        w3 = w3_ref[...]
        b3 = b3_ref[...]

        def body(c, carry):
            r = pl.multiple_of(c * chunk, chunk)
            x = obs_ref[pl.ds(r, chunk), :].astype(w_dtype)

            # Trunk: Linear -> ReLU -> Linear -> ReLU (f32 elementwise math).
            h1 = jnp.dot(x, w1, preferred_element_type=jnp.float32) + b1
            h1 = jnp.maximum(h1, 0.0)
            h2 = jnp.dot(h1.astype(w_dtype), w2, preferred_element_type=jnp.float32) + b2
            h2 = jnp.maximum(h2, 0.0)

            # Output layer + Tanh output activation + act_limit scaling.
            a = jnp.dot(h2.astype(w_dtype), w3, preferred_element_type=jnp.float32) + b3
            out_ref[pl.ds(r, chunk), :] = (act_limit * jnp.tanh(a)).astype(out_ref.dtype)
            return carry

        lax.fori_loop(0, n_chunks, body, 0)

    return actor_kernel


def prepare_params(params, weight_dtype=jnp.float32):
    """One-time parameter prep (hoisted out of the per-call wrapper).

    Weights are cast to the MXU feed dtype (bf16 recommended on v6e/v7x);
    biases stay f32 so all elementwise math is f32 (required on v5e).
    """
    return {
        "w1": params["w1"].astype(weight_dtype),
        "b1": params["b1"].astype(jnp.float32),
        "w2": params["w2"].astype(weight_dtype),
        "b2": params["b2"].astype(jnp.float32),
        "w3": params["w3"].astype(weight_dtype),
        "b3": params["b3"].astype(jnp.float32),
    }


def mlp_actor_forward(obs, prepared, act_limit, *, tile_b=512):
    """Fused MLPActor forward: returns (B, act_dim) actions in [-act_limit, act_limit]."""
    B, obs_dim = obs.shape
    act_dim = prepared["w3"].shape[1]

    # Batch DMA tile: multiple of 8 sublanes, no larger than (rounded-up) B.
    tb = _round_up(min(tile_b, _round_up(B, 8)), 8)
    # In-kernel compute slab (bounds vreg live ranges for big tiles).
    chunk = 128 if (tb % 128 == 0 and tb > 128) else tb
    n_chunks = tb // chunk
    grid = pl.cdiv(B, tb)  # ragged tail handled by Pallas edge-block masking (no jnp.pad)

    # Explicit VMEM budget: double-buffered obs/out tiles + resident weights + slack.
    weight_bytes = sum(int(v.size) * v.dtype.itemsize for v in prepared.values())
    io_bytes = tb * (obs_dim * obs.dtype.itemsize + act_dim * 4)
    vmem_limit = int(min(max(2 * (weight_bytes + io_bytes) + (2 << 20), 4 << 20), 64 << 20))

    const = lambda i: (0, 0)  # weights/biases: same block every step -> VMEM-resident

    out = pl.pallas_call(
        make_actor_kernel(float(act_limit), chunk, n_chunks),
        out_shape=jax.ShapeDtypeStruct((B, act_dim), jnp.float32),
        grid=(grid,),
        in_specs=[
            pl.BlockSpec((tb, obs_dim), lambda i: (i, 0)),
            pl.BlockSpec(prepared["w1"].shape, const),
            pl.BlockSpec(prepared["b1"].shape, const),
            pl.BlockSpec(prepared["w2"].shape, const),
            pl.BlockSpec(prepared["b2"].shape, const),
            pl.BlockSpec(prepared["w3"].shape, const),
            pl.BlockSpec(prepared["b3"].shape, const),
        ],
        out_specs=pl.BlockSpec((tb, act_dim), lambda i: (i, 0)),
        compiler_params=pltpu.CompilerParams(
            dimension_semantics=("parallel",),  # v7x: shards batch blocks across 2 TCs
            vmem_limit_bytes=vmem_limit,
        ),
    )(obs, prepared["w1"], prepared["b1"], prepared["w2"], prepared["b2"],
      prepared["w3"], prepared["b3"])

    return out  # exact (B, act_dim): no wrapper slice / extra HBM pass


def init_params(key, obs_dim, hidden_sizes, act_dim):
    """PyTorch nn.Linear-style init (uniform +-1/sqrt(fan_in)); weights stored (in, out)."""
    sizes = [obs_dim] + list(hidden_sizes) + [act_dim]
    keys = jax.random.split(key, 2 * (len(sizes) - 1))
    params = {}

    def linear(kw, kb, fan_in, fan_out):
        bound = 1.0 / np.sqrt(fan_in)
        w = jax.random.uniform(kw, (fan_in, fan_out), jnp.float32, -bound, bound)
        b = jax.random.uniform(kb, (1, fan_out), jnp.float32, -bound, bound)
        return w, b

    params["w1"], params["b1"] = linear(keys[0], keys[1], sizes[0], sizes[1])
    params["w2"], params["b2"] = linear(keys[2], keys[3], sizes[1], sizes[2])
    params["w3"], params["b3"] = linear(keys[4], keys[5], sizes[2], sizes[3])
    return params


def reference_forward(obs, params, act_limit):
    """Pure-JAX reference matching the PyTorch MLPActor forward."""
    h1 = jnp.maximum(obs @ params["w1"] + params["b1"], 0.0)
    h2 = jnp.maximum(h1 @ params["w2"] + params["b2"], 0.0)
    a = h2 @ params["w3"] + params["b3"]
    return act_limit * jnp.tanh(a)


if __name__ == "__main__":
    obs_dim, act_dim = 16, 8
    hidden_sizes = (32, 32)
    act_limit = 2.0

    root = jax.random.PRNGKey(0)
    k_params, k_obs1, k_obs2 = jax.random.split(root, 3)
    params = init_params(k_params, obs_dim, hidden_sizes, act_dim)

    # Exact f32 path (matches the PyTorch reference to float tolerance).
    prep_f32 = prepare_params(params)

    # Small batch: single grid step, block == full array.
    obs_small = jax.random.normal(k_obs1, (8, obs_dim), dtype=jnp.float32)
    pi = jax.block_until_ready(mlp_actor_forward(obs_small, prep_f32, act_limit))
    pi_ref = reference_forward(obs_small, params, act_limit)
    np.testing.assert_allclose(np.asarray(pi), np.asarray(pi_ref), rtol=1e-5, atol=1e-5)

    # Ragged larger batch with tile_b=256: 2 grid steps, 2x128-row compute chunks
    # per step, last block partial (44 valid rows) -> exercises the no-pad /
    # no-slice edge-block path.
    obs_big = jax.random.normal(k_obs2, (300, obs_dim), dtype=jnp.float32)
    pi_big = jax.block_until_ready(mlp_actor_forward(obs_big, prep_f32, act_limit, tile_b=256))
    pi_big_ref = reference_forward(obs_big, params, act_limit)
    np.testing.assert_allclose(np.asarray(pi_big), np.asarray(pi_big_ref), rtol=1e-5, atol=1e-5)

    # bf16 MXU feed (recommended default for v6e/v7x); loose tolerance vs f32 ref.
    prep_bf16 = prepare_params(params, weight_dtype=jnp.bfloat16)
    pi_bf16 = jax.block_until_ready(mlp_actor_forward(obs_big, prep_bf16, act_limit, tile_b=256))
    np.testing.assert_allclose(np.asarray(pi_bf16), np.asarray(pi_big_ref), rtol=5e-2, atol=5e-2)

    print("KERNEL_OK")
</pallas_src>

<mosaic_0001>
module attributes {stable_mosaic.version = 11 : i64} {
  func.func @actor_kernel(%arg0: i32, %arg1: memref<8x16xf32, #tpu.memory_space<vmem>>, %arg2: memref<16x32xf32, #tpu.memory_space<vmem>>, %arg3: memref<1x32xf32, #tpu.memory_space<vmem>>, %arg4: memref<32x32xf32, #tpu.memory_space<vmem>>, %arg5: memref<1x32xf32, #tpu.memory_space<vmem>>, %arg6: memref<32x8xf32, #tpu.memory_space<vmem>>, %arg7: memref<1x8xf32, #tpu.memory_space<vmem>>, %arg8: memref<8x8xf32, #tpu.memory_space<vmem>>) attributes {dimension_semantics = [#tpu.dimension_semantics<parallel>], iteration_bounds = array<i64: 1>, scalar_prefetch = 0 : i64, scratch_operands = 0 : i64, tpu.core_type = #tpu.core_type<tc>, window_params = [{transform_indices = @transform_0, window_bounds = array<i64: 8, 16>}, {pipeline_mode = #tpu.pipeline_mode<synchronous>, transform_indices = @transform_1, window_bounds = array<i64: 16, 32>}, {pipeline_mode = #tpu.pipeline_mode<synchronous>, transform_indices = @transform_2, window_bounds = array<i64: 1, 32>}, {pipeline_mode = #tpu.pipeline_mode<synchronous>, transform_indices = @transform_3, window_bounds = array<i64: 32, 32>}, {pipeline_mode = #tpu.pipeline_mode<synchronous>, transform_indices = @transform_4, window_bounds = array<i64: 1, 32>}, {pipeline_mode = #tpu.pipeline_mode<synchronous>, transform_indices = @transform_5, window_bounds = array<i64: 32, 8>}, {pipeline_mode = #tpu.pipeline_mode<synchronous>, transform_indices = @transform_6, window_bounds = array<i64: 1, 8>}, {transform_indices = @transform_7, window_bounds = array<i64: 8, 8>}]} {
    %c0 = arith.constant 0 : index
    %c0_0 = arith.constant 0 : index
    %0 = vector.load %arg2[%c0, %c0_0] : memref<16x32xf32, #tpu.memory_space<vmem>>, vector<16x32xf32>
    %c0_1 = arith.constant 0 : index
    %c0_2 = arith.constant 0 : index
    %1 = vector.load %arg3[%c0_1, %c0_2] : memref<1x32xf32, #tpu.memory_space<vmem>>, vector<1x32xf32>
    %c0_3 = arith.constant 0 : index
    %c0_4 = arith.constant 0 : index
    %2 = vector.load %arg4[%c0_3, %c0_4] : memref<32x32xf32, #tpu.memory_space<vmem>>, vector<32x32xf32>
    %c0_5 = arith.constant 0 : index
    %c0_6 = arith.constant 0 : index
    %3 = vector.load %arg5[%c0_5, %c0_6] : memref<1x32xf32, #tpu.memory_space<vmem>>, vector<1x32xf32>
    %c0_7 = arith.constant 0 : index
    %c0_8 = arith.constant 0 : index
    %4 = vector.load %arg6[%c0_7, %c0_8] : memref<32x8xf32, #tpu.memory_space<vmem>>, vector<32x8xf32>
    %c0_9 = arith.constant 0 : index
    %c0_10 = arith.constant 0 : index
    %5 = vector.load %arg7[%c0_9, %c0_10] : memref<1x8xf32, #tpu.memory_space<vmem>>, vector<1x8xf32>
    %c0_i32 = arith.constant 0 : i32
    %c8_i32 = arith.constant 8 : i32
    %6 = arith.muli %c0_i32, %c8_i32 : i32
    %7 = tpu.assume_multiple %6, 8 : i32
    %8 = arith.index_cast %7 : i32 to index
    %c0_11 = arith.constant 0 : index
    %9 = vector.load %arg1[%8, %c0_11] : memref<8x16xf32, #tpu.memory_space<vmem>>, vector<8x16xf32>
    %cst = arith.constant dense<0.000000e+00> : vector<8x32xf32>
    %10 = tpu.matmul %9, %0, %cst {dimension_numbers = #tpu.dot_dimension_numbers<[1], [0], [0], [1], [0, 0, 1, 1], [], []>} : vector<8x16xf32>, vector<16x32xf32>, vector<8x32xf32> -> vector<8x32xf32>
    %11 = vector.broadcast %1 : vector<1x32xf32> to vector<8x32xf32>
    %12 = arith.addf %10, %11 : vector<8x32xf32>
    %cst_12 = arith.constant 0.000000e+00 : f32
    %13 = vector.broadcast %cst_12 : f32 to vector<8x32xf32>
    %14 = arith.maximumf %12, %13 : vector<8x32xf32>
    %cst_13 = arith.constant dense<0.000000e+00> : vector<8x32xf32>
    %15 = tpu.matmul %14, %2, %cst_13 {dimension_numbers = #tpu.dot_dimension_numbers<[1], [0], [0], [1], [0, 0, 1, 1], [], []>} : vector<8x32xf32>, vector<32x32xf32>, vector<8x32xf32> -> vector<8x32xf32>
    %16 = vector.broadcast %3 : vector<1x32xf32> to vector<8x32xf32>
    %17 = arith.addf %15, %16 : vector<8x32xf32>
    %cst_14 = arith.constant 0.000000e+00 : f32
    %18 = vector.broadcast %cst_14 : f32 to vector<8x32xf32>
    %19 = arith.maximumf %17, %18 : vector<8x32xf32>
    %cst_15 = arith.constant dense<0.000000e+00> : vector<8x8xf32>
    %20 = tpu.matmul %19, %4, %cst_15 {dimension_numbers = #tpu.dot_dimension_numbers<[1], [0], [0], [1], [0, 0, 1, 1], [], []>} : vector<8x32xf32>, vector<32x8xf32>, vector<8x8xf32> -> vector<8x8xf32>
    %21 = vector.broadcast %5 : vector<1x8xf32> to vector<8x8xf32>
    %22 = arith.addf %20, %21 : vector<8x8xf32>
    %23 = math.tanh %22 : vector<8x8xf32>
    %cst_16 = arith.constant 2.000000e+00 : f32
    %24 = vector.broadcast %cst_16 : f32 to vector<8x8xf32>
    %25 = arith.mulf %24, %23 : vector<8x8xf32>
    %26 = arith.index_cast %7 : i32 to index
    %c0_17 = arith.constant 0 : index
    %27 = vector.load %arg8[%26, %c0_17] : memref<8x8xf32, #tpu.memory_space<vmem>>, vector<8x8xf32>
    tpu.vector_store %arg8[%26, %c0_17], %25 {strides = array<i32>} : memref<8x8xf32, #tpu.memory_space<vmem>>, vector<8x8xf32>,
    %c1_i32 = arith.constant 1 : i32
    return
  }
  func.func @transform_0(%arg0: i32) -> (i32, i32) {
    %c0_i32 = arith.constant 0 : i32
    %c0_i32_0 = arith.constant 0 : i32
    return %arg0, %c0_i32 : i32, i32
  }
  func.func @transform_1(%arg0: i32) -> (i32, i32) {
    %c0_i32 = arith.constant 0 : i32
    %c0_i32_0 = arith.constant 0 : i32
    %c0_i32_1 = arith.constant 0 : i32
    return %c0_i32, %c0_i32_0 : i32, i32
  }
  func.func @transform_2(%arg0: i32) -> (i32, i32) {
    %c0_i32 = arith.constant 0 : i32
    %c0_i32_0 = arith.constant 0 : i32
    %c0_i32_1 = arith.constant 0 : i32
    return %c0_i32, %c0_i32_0 : i32, i32
  }
  func.func @transform_3(%arg0: i32) -> (i32, i32) {
    %c0_i32 = arith.constant 0 : i32
    %c0_i32_0 = arith.constant 0 : i32
    %c0_i32_1 = arith.constant 0 : i32
    return %c0_i32, %c0_i32_0 : i32, i32
  }
  func.func @transform_4(%arg0: i32) -> (i32, i32) {
    %c0_i32 = arith.constant 0 : i32
    %c0_i32_0 = arith.constant 0 : i32
    %c0_i32_1 = arith.constant 0 : i32
    return %c0_i32, %c0_i32_0 : i32, i32
  }
  func.func @transform_5(%arg0: i32) -> (i32, i32) {
    %c0_i32 = arith.constant 0 : i32
    %c0_i32_0 = arith.constant 0 : i32
    %c0_i32_1 = arith.constant 0 : i32
    return %c0_i32, %c0_i32_0 : i32, i32
  }
  func.func @transform_6(%arg0: i32) -> (i32, i32) {
    %c0_i32 = arith.constant 0 : i32
    %c0_i32_0 = arith.constant 0 : i32
    %c0_i32_1 = arith.constant 0 : i32
    return %c0_i32, %c0_i32_0 : i32, i32
  }
  func.func @transform_7(%arg0: i32) -> (i32, i32) {
    %c0_i32 = arith.constant 0 : i32
    %c0_i32_0 = arith.constant 0 : i32
    return %arg0, %c0_i32 : i32, i32
  }
}

</mosaic_0001>

<bundles_post_ra>
// kernel: tpu_custom_call.1
= control target key start
LH: loop header
LB: loop body
LE: loop exit
PB: predicated region body
PF: predicated region fallthrough
CT: control target
= control target key end

     0   :  { %12 = vsyncpa [#allocation3], 0  ;;  %s545_s0 = inlined_call_operand.vmem [shape: f32[8,16], index: 0, kind: input, shape index: {}]   ;;  %s546_s1 = inlined_call_operand.hbm [shape: f32[16,32], index: 1, kind: input, shape index: {}]   ;;  %s547_s2 = inlined_call_operand.vmem [shape: f32[1,32], index: 2, kind: input, shape index: {}]   ;;  %s548_s3 = inlined_call_operand.vmem [shape: f32[32,32], index: 3, kind: input, shape index: {}]   ;;  %s549_s4 = inlined_call_operand.hbm [shape: f32[1,32], index: 4, kind: input, shape index: {}]   ;;  %s550_s5 = inlined_call_operand.vmem [shape: f32[32,8], index: 5, kind: input, shape index: {}]   ;;  %s551_s6 = inlined_call_operand.vmem [shape: f32[1,8], index: 6, kind: input, shape index: {}]   ;;  %s552_s7 = inlined_call_operand.hbm [shape: f32[8,8], index: 7, kind: output, shape index: {}]  }
   0x1   :  { %13 = vsyncpa [#allocation6], 0 }
   0x2   :  { %14 = vsyncpa [#allocation4], 0  ;;  %s451_s24 = smov [#allocation2]  }
   0x3   :  { %s22_s25 = sshll.u32 %s451_s24, 4  ;;  %s23_s25 = int_to_ptr.vmem [resolvable:$true] %s22_s25 }
   0x4   :  { %s393_s26 = scalar_lea.vmem %s23_s25, 256  ;;  %p398_p1 = scmp.lt.s32.totalorder %s23_s25, %s23_s25 }
   0x5   :  { %p394_p0 = scmp.ne.s32.totalorder %s23_s25, %s393_s26  ;;  %p399_p2 = scmp.lt.s32.totalorder %s393_s26, %s393_s26 }
   0x7   :  { %p400_p3 = por %p399_p2, %p398_p1 }
   0x9   :  { %p401_p4 = pnand %p400_p3, %p394_p0 }
   0xb   :  { %404 = shalt.err (!%p401_p4)
}
   0xc   :  { %s452_s27 = smov 128   ;;  %s453_s28 = smov 8  }
   0xd   :  { %28 = dma.hbm_to_vmem [thread:$0]  %s546_s1, 256, %s23_s25, [#allocation3], %s452_s27, %s452_s27, %s453_s28  }
   0xe   :  { %s454_s8 = smov [#allocation5]  }
   0xf   :  { %s39_s9 = sshll.u32 %s454_s8, 4  ;;  %s40_s9 = int_to_ptr.vmem [resolvable:$true] %s39_s9 }
  0x10   :  { %s413_s10 = scalar_lea.vmem %s40_s9, 16  ;;  %s417_s11 = scalar_lea.vmem %s40_s9, 32 }
  0x11   :  { %p414_p5 = scmp.ne.s32.totalorder %s40_s9, %s413_s10  ;;  %p418_p6 = scmp.lt.s32.totalorder %s40_s9, %s40_s9 }
  0x12   :  { %p419_p7 = scmp.lt.s32.totalorder %s417_s11, %s413_s10 }
  0x14   :  { %p420_p8 = por %p419_p7, %p418_p6 }
  0x16   :  { %p421_p9 = pnand %p420_p8, %p414_p5 }
  0x18   :  { %424 = shalt.err (!%p421_p9)
}
  0x19   :  { %42 = dma.hbm_to_vmem [thread:$0]  %s549_s4, 16, %s40_s9, [#allocation6]  }
  0x1a   :  { %445 = dma.done.wait [#allocation3], 256  }
  0x1b   :  { %446 = vsyncadd [#allocation3], 4294967040 }
  0x1c   :  { %447 = dma.done.wait [#allocation6], 16  }
  0x1d   :  { %448 = vsyncadd [#allocation6], 4294967280  ;;  %v455_v0 = vmov 0.0   ;;  %vm456_vm0 = vmmov 0   ;;  %v54_v1 = vld [vmem:[#allocation2 + $0x8] sm:$0xff]  ;;  %v53_v2 = vld [vmem:[#allocation2] sm:$0xff] }
  0x1e   :  { %347 = vmatprep.subr.mxu0 %v455_v0  ;;  %351 = vmatprep.mubr.msk.f32.mxu0 %vm456_vm0, %v455_v0  ;;  %v66_v3 = vld [vmem:[%s545_s0] sm:$0xff]  ;;  %vm73_vm1 = vcmask 130048   ;;  %v59_v4 = vld [vmem:[%s548_s3 + $0x18] sm:$0xff]  ;;  %v58_v5 = vld [vmem:[%s548_s3 + $0x10] sm:$0xff]  ;;  %vm154_vm2 = vcmask 261120   ;;  %s457_s8 = smov [#allocation7]  }
  0x1f   :  { %354 = vmatprep.subr.mxu1 %v455_v0  ;;  %362 = vmatprep.mubr.msk.f32.mxu1 %vm456_vm0, %v455_v0  ;;  %v57_v6 = vld [vmem:[%s548_s3 + $0x8] sm:$0xff]  ;;  %v56_v7 = vld [vmem:[%s548_s3] sm:$0xff]  ;;  %v64_v8 = vld [vmem:[%s550_s5 + $0x18] sm:$0xff]  ;;  %s318_s9 = sshll.u32 %s457_s8, 4  ;;  %vm310_vm3 = vcmask 64512   ;;  %s319_s9 = int_to_ptr.vmem [resolvable:$true] %s318_s9 }
  0x20   :  { %348 = vmatpush3.msra.mxu0 %v54_v1  ;;  %355 = vmatpush3.msra.mxu1 %v59_v4  ;;  %v328_v9 = vld [vmem:[%s547_s2] ss:$0 sm:$0xff]  ;;  %v63_v14 = vld [vmem:[%s550_s5 + $0x10] sm:$0xff]  ;;  %v62_v15 = vld [vmem:[%s550_s5 + $0x8] sm:$0xff]  ;;  %p430_p11 = scmp.lt.s32.totalorder %s319_s9, %s319_s9 }
  0x21   :  { %349 = vmatprep.subr.mxu0 %v455_v0  ;;  %356 = vmatprep.subr.mxu1 %v455_v0  ;;  %v61_v16 = vld [vmem:[%s550_s5] sm:$0xff]  ;;  %v330_v17 = vld [vmem:[#allocation5] ss:$0 sm:$0xff]  ;;  %s425_s5 = scalar_lea.vmem %s319_s9, 128 }
  0x22   :  { %350 = vmatpush3.msra.mxu0 %v53_v2  ;;  %357 = vmatpush3.msra.mxu1 %v58_v5  ;;  %v332_v22 = vld [vmem:[%s551_s6] ss:$0 sm:$0xff]  ;;  %p426_p10 = scmp.ne.s32.totalorder %s319_s9, %s425_s5  ;;  %p431_p12 = scmp.lt.s32.totalorder %s425_s5, %s425_s5 }
  0x23   :  { %352 = vmatmul.mubr.msk.f32.vlgmr.msra.gmra.mxu0 %vm73_vm1, %v66_v3  ;;  %365 = vmatprep.subr.mxu0 %v455_v0 }
  0x24   :  { %373 = vmatprep.mubr.msk.f32.mxu0 %vm456_vm0, %v455_v0  ;;  %358 = vmatprep.subr.mxu1 %v455_v0  ;;  %p432_p13 = por %p431_p12, %p430_p11 }
  0x25   :  { %359 = vmatpush3.msra.mxu1 %v57_v6  ;;  %366 = vmatpush3.msra.mxu0 %v64_v8 }
  0x26   :  { %360 = vmatprep.subr.mxu1 %v455_v0  ;;  %367 = vmatprep.subr.mxu0 %v455_v0  ;;  %p433_p0 = pnand %p432_p13, %p426_p10 }
  0x27   :  { %361 = vmatpush3.msra.mxu1 %v56_v7  ;;  %368 = vmatpush3.msra.mxu0 %v63_v14 }
  0x28   :  { %369 = vmatprep.subr.mxu0 %v455_v0 }
  0x29   :  { %370 = vmatpush3.msra.mxu0 %v62_v15 }
  0x2a   :  { %371 = vmatprep.subr.mxu0 %v455_v0 }
  0x2b   :  { %372 = vmatpush3.msra.mxu0 %v61_v16 }
  0xe3   :  { %v143_v10 = vpop.f32.mrf.mxu0 }
  0xe4   :  { %v144_v11 = vadd.f32 %v328_v9, %v143_v10 }
  0xe5   :  { %v353_v12 = vpop.f32.mrf.mxu0 }
  0xe6   :  { %v147_v13 = vmax.f32 %v144_v11, 0.0 }
  0xe8   :  { %363 = vmatmul.mubr.msk.f32.vlgmr.msra.gmra.mxu1 %vm154_vm2, %v147_v13 }
 0x1a8   :  { %v224_v18 = vpop.f32.mrf.mxu1 }
 0x1a9   :  { %v225_v19 = vadd.f32 %v330_v17, %v224_v18 }
 0x1aa   :  { %v364_v20 = vpop.f32.mrf.mxu1 }
 0x1ab   :  { %v228_v21 = vmax.f32 %v225_v19, 0.0 }
 0x1ad   :  { %374 = vmatmul.mubr.msk.f32.vlgmr.msra.gmra.mxu0 %vm154_vm2, %v228_v21 }
 0x26d   :  { %v304_v23 = vpop.f32.mrf.mxu0 }
 0x26e   :  { %v305_v24 = vadd.f32 %v332_v22, %v304_v23 }
 0x26f   :  { %v375_v25 = vpop.f32.mrf.mxu0 }
 0x270   :  { %383 = vtanh.f32 %v305_v24 }
 0x27d   :  { %v384_v26 = vpop.eup %383 }
 0x27e   :  { %v309_v27 = vmul.f32 2.0, %v384_v26 }
 0x280   :  { %311 = vst.msk [vmem:[#allocation7] sm:$0xff] %vm310_vm3, %v309_v27 }
 0x281   :  { %436 = shalt.err (!%p433_p0)
}
 0x282   :  { %321 = dma.vmem_to_hbm [thread:$0]  %s319_s9, 128, %s552_s7, [#allocation4]  }
 0x283   :  { %449 = dma.done.wait [#allocation4], 128  }
 0x284   :  { %450 = vsyncadd [#allocation4], 4294967168 }
 0x285   :  { %325 = vsyncpa [#allocation3], 1 }
 0x286   :  { %326 = vsyncpa [#allocation6], 1 }
 0x287   :  { %327 = vsyncpa [#allocation4], 1 }

</bundles_post_ra>
